<compile_context>
chip_gen: v7x
topology: tpu7x:2x2x1
jax: 0.10.0
libtpu: 0.0.40
codegen_flags: <defaults>
</compile_context>

<pallas_src>
import functools
import math

import jax
import jax.numpy as jnp
from jax import lax
from jax.experimental import pallas as pl
from jax.experimental.pallas import tpu as pltpu

NEG_SLOPE = 0.01  # nn.LeakyReLU default negative_slope


def _leaky(x):
    return jnp.where(x >= 0, x, NEG_SLOPE * x)


def _residual_block_kernel(x_ref, w1t_ref, b1_ref, w2t_ref, b2_ref, *rest,
                           H, W, Cin, Cout, has_skip):
    # x_ref  : (1, Cin, H*W)   f32   NCHW-flat input (one batch element)
    # w1t_ref: (9, Cout, Cin)  bf16  conv1 weights, one transposed tap per t=3*dy+dx
    # b1_ref : (Cout, 1)       f32
    # w2t_ref: (9, Cout, Cout) bf16  conv2 weights, transposed taps
    # b2_ref : (Cout, 1)       f32
    # if has_skip: wst_ref (Cout, Cin) bf16, bs_ref (Cout, 1) f32
    # o_ref  : (1, Cout, H*W)  f32   NCHW-flat, lane-dense output
    if has_skip:
        wst_ref, bs_ref, o_ref = rest
    else:
        (o_ref,) = rest

    L = H * W
    mxu_dt = w1t_ref.dtype  # bfloat16

    x_f32 = x_ref[0]                 # (Cin, L) f32
    x_bf = x_f32.astype(mxu_dt)      # single cast for the MXU paths

    # Column masks: taps with a +/-1 column shift must not read across a row
    # boundary of the flattened spatial axis.  Built once, shape (1, L).
    col = lax.broadcasted_iota(jnp.int32, (1, L), 1) % W
    left_ok = (col != 0).astype(mxu_dt)        # dx == 0 taps read column x-1
    right_ok = (col != W - 1).astype(mxu_dt)   # dx == 2 taps read column x+1

    def conv3x3_t(inp_bf, w_taps_ref, cin):
        # inp_bf: (cin, L) bf16, channel-major, spatially flattened.
        # Pad the flattened spatial axis by W+1 zeros on each side; tap (dy,dx)
        # is then the length-L lane slice starting at dy*W + dx.  The zero pad
        # supplies the top/bottom row padding exactly; the two column masks fix
        # the dx != 1 taps at the left/right image edges.
        zpad = jnp.zeros((cin, W + 1), mxu_dt)
        xp = jnp.concatenate([zpad, inp_bf, zpad], axis=1)   # (cin, L + 2W + 2)
        acc = jnp.zeros((Cout, L), jnp.float32)
        for dy in range(3):
            for dx in range(3):
                start = dy * W + dx
                tap = xp[:, start:start + L]                 # (cin, L) bf16
                if dx == 0:
                    tap = tap * left_ok
                elif dx == 2:
                    tap = tap * right_ok
                acc += jnp.dot(w_taps_ref[3 * dy + dx], tap,
                               preferred_element_type=jnp.float32)
        return acc                                           # (Cout, L) f32

    # conv1 -> LeakyReLU (f32 accumulate, bf16 MXU operands)
    h1 = _leaky(conv3x3_t(x_bf, w1t_ref, Cin) + b1_ref[...])        # (Cout, L)
    # conv2 -> LeakyReLU (intermediate fed to the MXU in bf16)
    out = _leaky(conv3x3_t(h1.astype(mxu_dt), w2t_ref, Cout) + b2_ref[...])

    if has_skip:
        identity = jnp.dot(wst_ref[...], x_bf,
                           preferred_element_type=jnp.float32) + bs_ref[...]
    else:
        identity = x_f32             # exact f32 identity skip (Cin == Cout)

    o_ref[0] = (out + identity).astype(o_ref.dtype)


def residual_block_pallas(x_nchw, params, *, vmem_limit_bytes=None):
    """x_nchw: (N, Cin, H, W) float32. Returns (N, Cout, H, W) float32."""
    w1, b1, w2, b2 = params["w1"], params["b1"], params["w2"], params["b2"]
    N, Cin, H, W = x_nchw.shape
    Cout = w1.shape[-1]
    L = H * W
    has_skip = Cin != Cout
    mxu_dt = jnp.bfloat16

    # NCHW-flat input: a free (contiguous) reshape, no transpose / pad pass.
    x_flat = x_nchw.reshape(N, Cin, L).astype(jnp.float32)

    # Per-tap transposed weights: w1t[3*dy+dx] = w1[dy, dx].T  -> (Cout, Cin).
    w1t = jnp.transpose(w1.reshape(9, Cin, Cout), (0, 2, 1)).astype(mxu_dt)
    w2t = jnp.transpose(w2.reshape(9, Cout, Cout), (0, 2, 1)).astype(mxu_dt)
    b1c = b1.reshape(Cout, 1).astype(jnp.float32)
    b2c = b2.reshape(Cout, 1).astype(jnp.float32)

    inputs = [x_flat, w1t, b1c, w2t, b2c]
    in_specs = [
        pl.BlockSpec((1, Cin, L), lambda n: (n, 0, 0)),
        pl.BlockSpec((9, Cout, Cin), lambda n: (0, 0, 0)),
        pl.BlockSpec((Cout, 1), lambda n: (0, 0)),
        pl.BlockSpec((9, Cout, Cout), lambda n: (0, 0, 0)),
        pl.BlockSpec((Cout, 1), lambda n: (0, 0)),
    ]
    if has_skip:
        wst = params["ws"].T.astype(mxu_dt)                  # (Cout, Cin)
        bsc = params["bs"].reshape(Cout, 1).astype(jnp.float32)
        inputs += [wst, bsc]
        in_specs += [pl.BlockSpec((Cout, Cin), lambda n: (0, 0)),
                     pl.BlockSpec((Cout, 1), lambda n: (0, 0))]

    kernel = functools.partial(_residual_block_kernel, H=H, W=W, Cin=Cin,
                               Cout=Cout, has_skip=has_skip)

    flops = 2 * N * L * Cout * (9 * Cin + 9 * Cout + (Cin if has_skip else 0))
    bytes_accessed = (sum(math.prod(a.shape) * a.dtype.itemsize for a in inputs)
                      + N * Cout * L * 4)
    cost = pl.CostEstimate(flops=flops, transcendentals=0,
                           bytes_accessed=bytes_accessed)

    cp_kwargs = dict(dimension_semantics=("parallel",))
    if vmem_limit_bytes is not None:
        cp_kwargs["vmem_limit_bytes"] = vmem_limit_bytes

    out_flat = pl.pallas_call(
        kernel,
        out_shape=jax.ShapeDtypeStruct((N, Cout, L), jnp.float32),
        grid_spec=pltpu.PrefetchScalarGridSpec(
            num_scalar_prefetch=0,
            grid=(N,),
            in_specs=in_specs,
            out_specs=pl.BlockSpec((1, Cout, L), lambda n: (n, 0, 0)),
        ),
        compiler_params=pltpu.CompilerParams(**cp_kwargs),
        cost_estimate=cost,
    )(*inputs)

    # Output is already NCHW-flat; reshape is free (contiguous).
    return out_flat.reshape(N, Cout, H, W)


def residual_block_ref(x_nchw, params):
    """Pure-JAX f32 reference (lax.conv) for verification."""
    w1, b1, w2, b2 = params["w1"], params["b1"], params["w2"], params["b2"]
    Cin = x_nchw.shape[1]
    Cout = w1.shape[-1]
    x = jnp.transpose(x_nchw, (0, 2, 3, 1))  # NHWC
    dn = ("NHWC", "HWIO", "NHWC")
    conv = lambda a, w: lax.conv_general_dilated(a, w, (1, 1), "SAME",
                                                 dimension_numbers=dn)
    out = _leaky(conv(x, w1) + b1)
    out = _leaky(conv(out, w2) + b2)
    if Cin != Cout:
        identity = conv(x, params["ws"].reshape(1, 1, Cin, Cout)) + params["bs"]
    else:
        identity = x
    out = out + identity
    return jnp.transpose(out, (0, 3, 1, 2))


def make_params(key, in_ch, out_ch):
    ks = jax.random.split(key, 6)
    scale = 0.1
    params = {
        "w1": scale * jax.random.normal(ks[0], (3, 3, in_ch, out_ch), jnp.float32),
        "b1": scale * jax.random.normal(ks[1], (out_ch,), jnp.float32),
        "w2": scale * jax.random.normal(ks[2], (3, 3, out_ch, out_ch), jnp.float32),
        "b2": scale * jax.random.normal(ks[3], (out_ch,), jnp.float32),
    }
    if in_ch != out_ch:
        params["ws"] = scale * jax.random.normal(ks[4], (in_ch, out_ch), jnp.float32)
        params["bs"] = scale * jax.random.normal(ks[5], (out_ch,), jnp.float32)
    return params


if __name__ == "__main__":
    key = jax.random.PRNGKey(0)
    k_x, k_p, k_p2 = jax.random.split(key, 3)

    # Case 1: in_ch != out_ch -> learned 1x1 skip.
    N, Cin, Cout, H, W = 2, 4, 8, 16, 16
    x = jax.random.normal(k_x, (N, Cin, H, W), jnp.float32)
    params = make_params(k_p, Cin, Cout)
    out = jax.block_until_ready(residual_block_pallas(x, params))
    ref = residual_block_ref(x, params)
    assert out.shape == (N, Cout, H, W)
    # bf16 MXU operands with f32 accumulation vs. a pure-f32 reference.
    assert jnp.allclose(out, ref, rtol=2e-2, atol=2e-2), "skip-conv case mismatch"

    # Case 2: in_ch == out_ch -> exact f32 identity skip.
    x2 = jax.random.normal(k_x, (N, Cout, H, W), jnp.float32)
    params2 = make_params(k_p2, Cout, Cout)
    out2 = jax.block_until_ready(residual_block_pallas(x2, params2))
    ref2 = residual_block_ref(x2, params2)
    assert out2.shape == (N, Cout, H, W)
    assert jnp.allclose(out2, ref2, rtol=2e-2, atol=2e-2), "identity case mismatch"

    print("KERNEL_OK")
</pallas_src>

<mosaic_0001>
module attributes {stable_mosaic.version = 11 : i64} {
  func.func @_residual_block_kernel(%arg0: i32, %arg1: memref<1x4x256xf32, #tpu.memory_space<vmem>>, %arg2: memref<9x8x4xbf16, #tpu.memory_space<vmem>>, %arg3: memref<8x1xf32, #tpu.memory_space<vmem>>, %arg4: memref<9x8x8xbf16, #tpu.memory_space<vmem>>, %arg5: memref<8x1xf32, #tpu.memory_space<vmem>>, %arg6: memref<8x4xbf16, #tpu.memory_space<vmem>>, %arg7: memref<8x1xf32, #tpu.memory_space<vmem>>, %arg8: memref<1x8x256xf32, #tpu.memory_space<vmem>>) attributes {dimension_semantics = [#tpu.dimension_semantics<parallel>], iteration_bounds = array<i64: 2>, scalar_prefetch = 0 : i64, scratch_operands = 0 : i64, tpu.core_type = #tpu.core_type<tc>, window_params = [{transform_indices = @transform_0, window_bounds = array<i64: 1, 4, 256>}, {pipeline_mode = #tpu.pipeline_mode<synchronous>, transform_indices = @transform_1, window_bounds = array<i64: 9, 8, 4>}, {pipeline_mode = #tpu.pipeline_mode<synchronous>, transform_indices = @transform_2, window_bounds = array<i64: 8, 1>}, {pipeline_mode = #tpu.pipeline_mode<synchronous>, transform_indices = @transform_3, window_bounds = array<i64: 9, 8, 8>}, {pipeline_mode = #tpu.pipeline_mode<synchronous>, transform_indices = @transform_4, window_bounds = array<i64: 8, 1>}, {pipeline_mode = #tpu.pipeline_mode<synchronous>, transform_indices = @transform_5, window_bounds = array<i64: 8, 4>}, {pipeline_mode = #tpu.pipeline_mode<synchronous>, transform_indices = @transform_6, window_bounds = array<i64: 8, 1>}, {transform_indices = @transform_7, window_bounds = array<i64: 1, 8, 256>}]} {
    %c0 = arith.constant 0 : index
    %c0_0 = arith.constant 0 : index
    %c0_1 = arith.constant 0 : index
    %0 = vector.load %arg1[%c0, %c0_0, %c0_1] : memref<1x4x256xf32, #tpu.memory_space<vmem>>, vector<1x4x256xf32>
    %1 = vector.shape_cast %0 : vector<1x4x256xf32> to vector<4x256xf32>
    %2 = arith.truncf %1 : vector<4x256xf32> to vector<4x256xbf16>
    %3 = tpu.iota {dimensions = array<i32: 1>} : vector<1x256xi32>
    %c16_i32 = arith.constant 16 : i32
    %c0_i32 = arith.constant 0 : i32
    %4 = arith.cmpi eq, %c16_i32, %c0_i32 : i32
    %c1_i32 = arith.constant 1 : i32
    %5 = arith.select %4, %c1_i32, %c16_i32 : i32
    %6 = vector.broadcast %5 : i32 to vector<1x256xi32>
    %7 = arith.remsi %3, %6 : vector<1x256xi32>
    %c0_i32_2 = arith.constant 0 : i32
    %8 = vector.broadcast %c0_i32_2 : i32 to vector<1x256xi32>
    %9 = arith.cmpi ne, %7, %8 : vector<1x256xi32>
    %c0_i32_3 = arith.constant 0 : i32
    %10 = vector.broadcast %c0_i32_3 : i32 to vector<1x256xi32>
    %11 = arith.cmpi slt, %7, %10 : vector<1x256xi32>
    %c0_i32_4 = arith.constant 0 : i32
    %12 = arith.cmpi slt, %5, %c0_i32_4 : i32
    %13 = vector.broadcast %12 : i1 to vector<1x256xi1>
    %14 = vector.broadcast %13 : vector<1x256xi1> to vector<1x256xi1>
    %15 = arith.xori %11, %14 : vector<1x256xi1>
    %16 = arith.andi %15, %9 : vector<1x256xi1>
    %17 = vector.broadcast %5 : i32 to vector<1x256xi32>
    %18 = arith.addi %7, %17 : vector<1x256xi32>
    %19 = arith.select %16, %18, %7 : vector<1x256xi1>, vector<1x256xi32>
    %c0_i32_5 = arith.constant 0 : i32
    %20 = vector.broadcast %c0_i32_5 : i32 to vector<1x256xi32>
    %21 = arith.cmpi ne, %19, %20 : vector<1x256xi32>
    %22 = arith.extui %21 : vector<1x256xi1> to vector<1x256xi32>
    %23 = arith.sitofp %22 : vector<1x256xi32> to vector<1x256xf32>
    %24 = arith.truncf %23 : vector<1x256xf32> to vector<1x256xbf16>
    %c15_i32 = arith.constant 15 : i32
    %25 = vector.broadcast %c15_i32 : i32 to vector<1x256xi32>
    %26 = arith.cmpi ne, %19, %25 : vector<1x256xi32>
    %27 = arith.extui %26 : vector<1x256xi1> to vector<1x256xi32>
    %28 = arith.sitofp %27 : vector<1x256xi32> to vector<1x256xf32>
    %29 = arith.truncf %28 : vector<1x256xf32> to vector<1x256xbf16>
    %cst = arith.constant 0.000000e+00 : bf16
    %30 = vector.broadcast %cst : bf16 to vector<4x17xbf16>
    %31 = tpu.concatenate %30, %2, %30 in 1 : vector<4x17xbf16>, vector<4x256xbf16>, vector<4x17xbf16> -> vector<4x290xbf16>
    %cst_6 = arith.constant 0.000000e+00 : f32
    %32 = vector.broadcast %cst_6 : f32 to vector<8x256xf32>
    %33 = vector.extract_strided_slice %31 {offsets = [0, 0], sizes = [4, 256], strides = [1, 1]} : vector<4x290xbf16> to vector<4x256xbf16>
    %34 = vector.broadcast %24 : vector<1x256xbf16> to vector<4x256xbf16>
    %35 = arith.mulf %33, %34 : vector<4x256xbf16>
    %c0_7 = arith.constant 0 : index
    %c0_8 = arith.constant 0 : index
    %c0_9 = arith.constant 0 : index
    %36 = vector.load %arg2[%c0_7, %c0_8, %c0_9] : memref<9x8x4xbf16, #tpu.memory_space<vmem>>, vector<1x8x4xbf16>
    %37 = vector.shape_cast %36 : vector<1x8x4xbf16> to vector<8x4xbf16>
    %cst_10 = arith.constant dense<0.000000e+00> : vector<8x256xf32>
    %38 = tpu.matmul %37, %35, %cst_10 {dimension_numbers = #tpu.dot_dimension_numbers<[1], [0], [0], [1], [0, 0, 1, 1], [], []>} : vector<8x4xbf16>, vector<4x256xbf16>, vector<8x256xf32> -> vector<8x256xf32>
    %39 = arith.addf %32, %38 : vector<8x256xf32>
    %40 = vector.extract_strided_slice %31 {offsets = [0, 1], sizes = [4, 256], strides = [1, 1]} : vector<4x290xbf16> to vector<4x256xbf16>
    %c1 = arith.constant 1 : index
    %c0_11 = arith.constant 0 : index
    %c0_12 = arith.constant 0 : index
    %41 = vector.load %arg2[%c1, %c0_11, %c0_12] : memref<9x8x4xbf16, #tpu.memory_space<vmem>>, vector<1x8x4xbf16>
    %42 = vector.shape_cast %41 : vector<1x8x4xbf16> to vector<8x4xbf16>
    %cst_13 = arith.constant dense<0.000000e+00> : vector<8x256xf32>
    %43 = tpu.matmul %42, %40, %cst_13 {dimension_numbers = #tpu.dot_dimension_numbers<[1], [0], [0], [1], [0, 0, 1, 1], [], []>} : vector<8x4xbf16>, vector<4x256xbf16>, vector<8x256xf32> -> vector<8x256xf32>
    %44 = arith.addf %39, %43 : vector<8x256xf32>
    %45 = vector.extract_strided_slice %31 {offsets = [0, 2], sizes = [4, 256], strides = [1, 1]} : vector<4x290xbf16> to vector<4x256xbf16>
    %46 = vector.broadcast %29 : vector<1x256xbf16> to vector<4x256xbf16>
    %47 = arith.mulf %45, %46 : vector<4x256xbf16>
    %c2 = arith.constant 2 : index
    %c0_14 = arith.constant 0 : index
    %c0_15 = arith.constant 0 : index
    %48 = vector.load %arg2[%c2, %c0_14, %c0_15] : memref<9x8x4xbf16, #tpu.memory_space<vmem>>, vector<1x8x4xbf16>
    %49 = vector.shape_cast %48 : vector<1x8x4xbf16> to vector<8x4xbf16>
    %cst_16 = arith.constant dense<0.000000e+00> : vector<8x256xf32>
    %50 = tpu.matmul %49, %47, %cst_16 {dimension_numbers = #tpu.dot_dimension_numbers<[1], [0], [0], [1], [0, 0, 1, 1], [], []>} : vector<8x4xbf16>, vector<4x256xbf16>, vector<8x256xf32> -> vector<8x256xf32>
    %51 = arith.addf %44, %50 : vector<8x256xf32>
    %52 = vector.extract_strided_slice %31 {offsets = [0, 16], sizes = [4, 256], strides = [1, 1]} : vector<4x290xbf16> to vector<4x256xbf16>
    %53 = vector.broadcast %24 : vector<1x256xbf16> to vector<4x256xbf16>
    %54 = arith.mulf %52, %53 : vector<4x256xbf16>
    %c3 = arith.constant 3 : index
    %c0_17 = arith.constant 0 : index
    %c0_18 = arith.constant 0 : index
    %55 = vector.load %arg2[%c3, %c0_17, %c0_18] : memref<9x8x4xbf16, #tpu.memory_space<vmem>>, vector<1x8x4xbf16>
    %56 = vector.shape_cast %55 : vector<1x8x4xbf16> to vector<8x4xbf16>
    %cst_19 = arith.constant dense<0.000000e+00> : vector<8x256xf32>
    %57 = tpu.matmul %56, %54, %cst_19 {dimension_numbers = #tpu.dot_dimension_numbers<[1], [0], [0], [1], [0, 0, 1, 1], [], []>} : vector<8x4xbf16>, vector<4x256xbf16>, vector<8x256xf32> -> vector<8x256xf32>
    %58 = arith.addf %51, %57 : vector<8x256xf32>
    %59 = vector.extract_strided_slice %31 {offsets = [0, 17], sizes = [4, 256], strides = [1, 1]} : vector<4x290xbf16> to vector<4x256xbf16>
    %c4 = arith.constant 4 : index
    %c0_20 = arith.constant 0 : index
    %c0_21 = arith.constant 0 : index
    %60 = vector.load %arg2[%c4, %c0_20, %c0_21] : memref<9x8x4xbf16, #tpu.memory_space<vmem>>, vector<1x8x4xbf16>
    %61 = vector.shape_cast %60 : vector<1x8x4xbf16> to vector<8x4xbf16>
    %cst_22 = arith.constant dense<0.000000e+00> : vector<8x256xf32>
    %62 = tpu.matmul %61, %59, %cst_22 {dimension_numbers = #tpu.dot_dimension_numbers<[1], [0], [0], [1], [0, 0, 1, 1], [], []>} : vector<8x4xbf16>, vector<4x256xbf16>, vector<8x256xf32> -> vector<8x256xf32>
    %63 = arith.addf %58, %62 : vector<8x256xf32>
    %64 = vector.extract_strided_slice %31 {offsets = [0, 18], sizes = [4, 256], strides = [1, 1]} : vector<4x290xbf16> to vector<4x256xbf16>
    %65 = vector.broadcast %29 : vector<1x256xbf16> to vector<4x256xbf16>
    %66 = arith.mulf %64, %65 : vector<4x256xbf16>
    %c5 = arith.constant 5 : index
    %c0_23 = arith.constant 0 : index
    %c0_24 = arith.constant 0 : index
    %67 = vector.load %arg2[%c5, %c0_23, %c0_24] : memref<9x8x4xbf16, #tpu.memory_space<vmem>>, vector<1x8x4xbf16>
    %68 = vector.shape_cast %67 : vector<1x8x4xbf16> to vector<8x4xbf16>
    %cst_25 = arith.constant dense<0.000000e+00> : vector<8x256xf32>
    %69 = tpu.matmul %68, %66, %cst_25 {dimension_numbers = #tpu.dot_dimension_numbers<[1], [0], [0], [1], [0, 0, 1, 1], [], []>} : vector<8x4xbf16>, vector<4x256xbf16>, vector<8x256xf32> -> vector<8x256xf32>
    %70 = arith.addf %63, %69 : vector<8x256xf32>
    %71 = vector.extract_strided_slice %31 {offsets = [0, 32], sizes = [4, 256], strides = [1, 1]} : vector<4x290xbf16> to vector<4x256xbf16>
    %72 = vector.broadcast %24 : vector<1x256xbf16> to vector<4x256xbf16>
    %73 = arith.mulf %71, %72 : vector<4x256xbf16>
    %c6 = arith.constant 6 : index
    %c0_26 = arith.constant 0 : index
    %c0_27 = arith.constant 0 : index
    %74 = vector.load %arg2[%c6, %c0_26, %c0_27] : memref<9x8x4xbf16, #tpu.memory_space<vmem>>, vector<1x8x4xbf16>
    %75 = vector.shape_cast %74 : vector<1x8x4xbf16> to vector<8x4xbf16>
    %cst_28 = arith.constant dense<0.000000e+00> : vector<8x256xf32>
    %76 = tpu.matmul %75, %73, %cst_28 {dimension_numbers = #tpu.dot_dimension_numbers<[1], [0], [0], [1], [0, 0, 1, 1], [], []>} : vector<8x4xbf16>, vector<4x256xbf16>, vector<8x256xf32> -> vector<8x256xf32>
    %77 = arith.addf %70, %76 : vector<8x256xf32>
    %78 = vector.extract_strided_slice %31 {offsets = [0, 33], sizes = [4, 256], strides = [1, 1]} : vector<4x290xbf16> to vector<4x256xbf16>
    %c7 = arith.constant 7 : index
    %c0_29 = arith.constant 0 : index
    %c0_30 = arith.constant 0 : index
    %79 = vector.load %arg2[%c7, %c0_29, %c0_30] : memref<9x8x4xbf16, #tpu.memory_space<vmem>>, vector<1x8x4xbf16>
    %80 = vector.shape_cast %79 : vector<1x8x4xbf16> to vector<8x4xbf16>
    %cst_31 = arith.constant dense<0.000000e+00> : vector<8x256xf32>
    %81 = tpu.matmul %80, %78, %cst_31 {dimension_numbers = #tpu.dot_dimension_numbers<[1], [0], [0], [1], [0, 0, 1, 1], [], []>} : vector<8x4xbf16>, vector<4x256xbf16>, vector<8x256xf32> -> vector<8x256xf32>
    %82 = arith.addf %77, %81 : vector<8x256xf32>
    %83 = vector.extract_strided_slice %31 {offsets = [0, 34], sizes = [4, 256], strides = [1, 1]} : vector<4x290xbf16> to vector<4x256xbf16>
    %84 = vector.broadcast %29 : vector<1x256xbf16> to vector<4x256xbf16>
    %85 = arith.mulf %83, %84 : vector<4x256xbf16>
    %c8 = arith.constant 8 : index
    %c0_32 = arith.constant 0 : index
    %c0_33 = arith.constant 0 : index
    %86 = vector.load %arg2[%c8, %c0_32, %c0_33] : memref<9x8x4xbf16, #tpu.memory_space<vmem>>, vector<1x8x4xbf16>
    %87 = vector.shape_cast %86 : vector<1x8x4xbf16> to vector<8x4xbf16>
    %cst_34 = arith.constant dense<0.000000e+00> : vector<8x256xf32>
    %88 = tpu.matmul %87, %85, %cst_34 {dimension_numbers = #tpu.dot_dimension_numbers<[1], [0], [0], [1], [0, 0, 1, 1], [], []>} : vector<8x4xbf16>, vector<4x256xbf16>, vector<8x256xf32> -> vector<8x256xf32>
    %89 = arith.addf %82, %88 : vector<8x256xf32>
    %c0_35 = arith.constant 0 : index
    %c0_36 = arith.constant 0 : index
    %90 = vector.load %arg3[%c0_35, %c0_36] : memref<8x1xf32, #tpu.memory_space<vmem>>, vector<8x1xf32>
    %91 = vector.broadcast %90 : vector<8x1xf32> to vector<8x256xf32>
    %92 = arith.addf %89, %91 : vector<8x256xf32>
    %cst_37 = arith.constant 0.000000e+00 : f32
    %93 = vector.broadcast %cst_37 : f32 to vector<8x256xf32>
    %94 = arith.cmpf oge, %92, %93 : vector<8x256xf32>
    %cst_38 = arith.constant 0.00999999977 : f32
    %95 = vector.broadcast %cst_38 : f32 to vector<8x256xf32>
    %96 = arith.mulf %95, %92 : vector<8x256xf32>
    %97 = arith.select %94, %92, %96 : vector<8x256xi1>, vector<8x256xf32>
    %98 = arith.truncf %97 : vector<8x256xf32> to vector<8x256xbf16>
    %cst_39 = arith.constant 0.000000e+00 : bf16
    %99 = vector.broadcast %cst_39 : bf16 to vector<8x17xbf16>
    %100 = tpu.concatenate %99, %98, %99 in 1 : vector<8x17xbf16>, vector<8x256xbf16>, vector<8x17xbf16> -> vector<8x290xbf16>
    %cst_40 = arith.constant 0.000000e+00 : f32
    %101 = vector.broadcast %cst_40 : f32 to vector<8x256xf32>
    %102 = vector.extract_strided_slice %100 {offsets = [0, 0], sizes = [8, 256], strides = [1, 1]} : vector<8x290xbf16> to vector<8x256xbf16>
    %103 = vector.broadcast %24 : vector<1x256xbf16> to vector<8x256xbf16>
    %104 = arith.mulf %102, %103 : vector<8x256xbf16>
    %c0_41 = arith.constant 0 : index
    %c0_42 = arith.constant 0 : index
    %c0_43 = arith.constant 0 : index
    %105 = vector.load %arg4[%c0_41, %c0_42, %c0_43] : memref<9x8x8xbf16, #tpu.memory_space<vmem>>, vector<1x8x8xbf16>
    %106 = vector.shape_cast %105 : vector<1x8x8xbf16> to vector<8x8xbf16>
    %cst_44 = arith.constant dense<0.000000e+00> : vector<8x256xf32>
    %107 = tpu.matmul %106, %104, %cst_44 {dimension_numbers = #tpu.dot_dimension_numbers<[1], [0], [0], [1], [0, 0, 1, 1], [], []>} : vector<8x8xbf16>, vector<8x256xbf16>, vector<8x256xf32> -> vector<8x256xf32>
    %108 = arith.addf %101, %107 : vector<8x256xf32>
    %109 = vector.extract_strided_slice %100 {offsets = [0, 1], sizes = [8, 256], strides = [1, 1]} : vector<8x290xbf16> to vector<8x256xbf16>
    %c1_45 = arith.constant 1 : index
    %c0_46 = arith.constant 0 : index
    %c0_47 = arith.constant 0 : index
    %110 = vector.load %arg4[%c1_45, %c0_46, %c0_47] : memref<9x8x8xbf16, #tpu.memory_space<vmem>>, vector<1x8x8xbf16>
    %111 = vector.shape_cast %110 : vector<1x8x8xbf16> to vector<8x8xbf16>
    %cst_48 = arith.constant dense<0.000000e+00> : vector<8x256xf32>
    %112 = tpu.matmul %111, %109, %cst_48 {dimension_numbers = #tpu.dot_dimension_numbers<[1], [0], [0], [1], [0, 0, 1, 1], [], []>} : vector<8x8xbf16>, vector<8x256xbf16>, vector<8x256xf32> -> vector<8x256xf32>
    %113 = arith.addf %108, %112 : vector<8x256xf32>
    %114 = vector.extract_strided_slice %100 {offsets = [0, 2], sizes = [8, 256], strides = [1, 1]} : vector<8x290xbf16> to vector<8x256xbf16>
    %115 = vector.broadcast %29 : vector<1x256xbf16> to vector<8x256xbf16>
    %116 = arith.mulf %114, %115 : vector<8x256xbf16>
    %c2_49 = arith.constant 2 : index
    %c0_50 = arith.constant 0 : index
    %c0_51 = arith.constant 0 : index
    %117 = vector.load %arg4[%c2_49, %c0_50, %c0_51] : memref<9x8x8xbf16, #tpu.memory_space<vmem>>, vector<1x8x8xbf16>
    %118 = vector.shape_cast %117 : vector<1x8x8xbf16> to vector<8x8xbf16>
    %cst_52 = arith.constant dense<0.000000e+00> : vector<8x256xf32>
    %119 = tpu.matmul %118, %116, %cst_52 {dimension_numbers = #tpu.dot_dimension_numbers<[1], [0], [0], [1], [0, 0, 1, 1], [], []>} : vector<8x8xbf16>, vector<8x256xbf16>, vector<8x256xf32> -> vector<8x256xf32>
    %120 = arith.addf %113, %119 : vector<8x256xf32>
    %121 = vector.extract_strided_slice %100 {offsets = [0, 16], sizes = [8, 256], strides = [1, 1]} : vector<8x290xbf16> to vector<8x256xbf16>
    %122 = vector.broadcast %24 : vector<1x256xbf16> to vector<8x256xbf16>
    %123 = arith.mulf %121, %122 : vector<8x256xbf16>
    %c3_53 = arith.constant 3 : index
    %c0_54 = arith.constant 0 : index
    %c0_55 = arith.constant 0 : index
    %124 = vector.load %arg4[%c3_53, %c0_54, %c0_55] : memref<9x8x8xbf16, #tpu.memory_space<vmem>>, vector<1x8x8xbf16>
    %125 = vector.shape_cast %124 : vector<1x8x8xbf16> to vector<8x8xbf16>
    %cst_56 = arith.constant dense<0.000000e+00> : vector<8x256xf32>
    %126 = tpu.matmul %125, %123, %cst_56 {dimension_numbers = #tpu.dot_dimension_numbers<[1], [0], [0], [1], [0, 0, 1, 1], [], []>} : vector<8x8xbf16>, vector<8x256xbf16>, vector<8x256xf32> -> vector<8x256xf32>
    %127 = arith.addf %120, %126 : vector<8x256xf32>
    %128 = vector.extract_strided_slice %100 {offsets = [0, 17], sizes = [8, 256], strides = [1, 1]} : vector<8x290xbf16> to vector<8x256xbf16>
    %c4_57 = arith.constant 4 : index
    %c0_58 = arith.constant 0 : index
    %c0_59 = arith.constant 0 : index
    %129 = vector.load %arg4[%c4_57, %c0_58, %c0_59] : memref<9x8x8xbf16, #tpu.memory_space<vmem>>, vector<1x8x8xbf16>
    %130 = vector.shape_cast %129 : vector<1x8x8xbf16> to vector<8x8xbf16>
    %cst_60 = arith.constant dense<0.000000e+00> : vector<8x256xf32>
    %131 = tpu.matmul %130, %128, %cst_60 {dimension_numbers = #tpu.dot_dimension_numbers<[1], [0], [0], [1], [0, 0, 1, 1], [], []>} : vector<8x8xbf16>, vector<8x256xbf16>, vector<8x256xf32> -> vector<8x256xf32>
    %132 = arith.addf %127, %131 : vector<8x256xf32>
    %133 = vector.extract_strided_slice %100 {offsets = [0, 18], sizes = [8, 256], strides = [1, 1]} : vector<8x290xbf16> to vector<8x256xbf16>
    %134 = vector.broadcast %29 : vector<1x256xbf16> to vector<8x256xbf16>
    %135 = arith.mulf %133, %134 : vector<8x256xbf16>
    %c5_61 = arith.constant 5 : index
    %c0_62 = arith.constant 0 : index
    %c0_63 = arith.constant 0 : index
    %136 = vector.load %arg4[%c5_61, %c0_62, %c0_63] : memref<9x8x8xbf16, #tpu.memory_space<vmem>>, vector<1x8x8xbf16>
    %137 = vector.shape_cast %136 : vector<1x8x8xbf16> to vector<8x8xbf16>
    %cst_64 = arith.constant dense<0.000000e+00> : vector<8x256xf32>
    %138 = tpu.matmul %137, %135, %cst_64 {dimension_numbers = #tpu.dot_dimension_numbers<[1], [0], [0], [1], [0, 0, 1, 1], [], []>} : vector<8x8xbf16>, vector<8x256xbf16>, vector<8x256xf32> -> vector<8x256xf32>
    %139 = arith.addf %132, %138 : vector<8x256xf32>
    %140 = vector.extract_strided_slice %100 {offsets = [0, 32], sizes = [8, 256], strides = [1, 1]} : vector<8x290xbf16> to vector<8x256xbf16>
    %141 = vector.broadcast %24 : vector<1x256xbf16> to vector<8x256xbf16>
    %142 = arith.mulf %140, %141 : vector<8x256xbf16>
    %c6_65 = arith.constant 6 : index
    %c0_66 = arith.constant 0 : index
    %c0_67 = arith.constant 0 : index
    %143 = vector.load %arg4[%c6_65, %c0_66, %c0_67] : memref<9x8x8xbf16, #tpu.memory_space<vmem>>, vector<1x8x8xbf16>
    %144 = vector.shape_cast %143 : vector<1x8x8xbf16> to vector<8x8xbf16>
    %cst_68 = arith.constant dense<0.000000e+00> : vector<8x256xf32>
    %145 = tpu.matmul %144, %142, %cst_68 {dimension_numbers = #tpu.dot_dimension_numbers<[1], [0], [0], [1], [0, 0, 1, 1], [], []>} : vector<8x8xbf16>, vector<8x256xbf16>, vector<8x256xf32> -> vector<8x256xf32>
    %146 = arith.addf %139, %145 : vector<8x256xf32>
    %147 = vector.extract_strided_slice %100 {offsets = [0, 33], sizes = [8, 256], strides = [1, 1]} : vector<8x290xbf16> to vector<8x256xbf16>
    %c7_69 = arith.constant 7 : index
    %c0_70 = arith.constant 0 : index
    %c0_71 = arith.constant 0 : index
    %148 = vector.load %arg4[%c7_69, %c0_70, %c0_71] : memref<9x8x8xbf16, #tpu.memory_space<vmem>>, vector<1x8x8xbf16>
    %149 = vector.shape_cast %148 : vector<1x8x8xbf16> to vector<8x8xbf16>
    %cst_72 = arith.constant dense<0.000000e+00> : vector<8x256xf32>
    %150 = tpu.matmul %149, %147, %cst_72 {dimension_numbers = #tpu.dot_dimension_numbers<[1], [0], [0], [1], [0, 0, 1, 1], [], []>} : vector<8x8xbf16>, vector<8x256xbf16>, vector<8x256xf32> -> vector<8x256xf32>
    %151 = arith.addf %146, %150 : vector<8x256xf32>
    %152 = vector.extract_strided_slice %100 {offsets = [0, 34], sizes = [8, 256], strides = [1, 1]} : vector<8x290xbf16> to vector<8x256xbf16>
    %153 = vector.broadcast %29 : vector<1x256xbf16> to vector<8x256xbf16>
    %154 = arith.mulf %152, %153 : vector<8x256xbf16>
    %c8_73 = arith.constant 8 : index
    %c0_74 = arith.constant 0 : index
    %c0_75 = arith.constant 0 : index
    %155 = vector.load %arg4[%c8_73, %c0_74, %c0_75] : memref<9x8x8xbf16, #tpu.memory_space<vmem>>, vector<1x8x8xbf16>
    %156 = vector.shape_cast %155 : vector<1x8x8xbf16> to vector<8x8xbf16>
    %cst_76 = arith.constant dense<0.000000e+00> : vector<8x256xf32>
    %157 = tpu.matmul %156, %154, %cst_76 {dimension_numbers = #tpu.dot_dimension_numbers<[1], [0], [0], [1], [0, 0, 1, 1], [], []>} : vector<8x8xbf16>, vector<8x256xbf16>, vector<8x256xf32> -> vector<8x256xf32>
    %158 = arith.addf %151, %157 : vector<8x256xf32>
    %c0_77 = arith.constant 0 : index
    %c0_78 = arith.constant 0 : index
    %159 = vector.load %arg5[%c0_77, %c0_78] : memref<8x1xf32, #tpu.memory_space<vmem>>, vector<8x1xf32>
    %160 = vector.broadcast %159 : vector<8x1xf32> to vector<8x256xf32>
    %161 = arith.addf %158, %160 : vector<8x256xf32>
    %cst_79 = arith.constant 0.000000e+00 : f32
    %162 = vector.broadcast %cst_79 : f32 to vector<8x256xf32>
    %163 = arith.cmpf oge, %161, %162 : vector<8x256xf32>
    %cst_80 = arith.constant 0.00999999977 : f32
    %164 = vector.broadcast %cst_80 : f32 to vector<8x256xf32>
    %165 = arith.mulf %164, %161 : vector<8x256xf32>
    %166 = arith.select %163, %161, %165 : vector<8x256xi1>, vector<8x256xf32>
    %c0_81 = arith.constant 0 : index
    %c0_82 = arith.constant 0 : index
    %167 = vector.load %arg6[%c0_81, %c0_82] : memref<8x4xbf16, #tpu.memory_space<vmem>>, vector<8x4xbf16>
    %cst_83 = arith.constant dense<0.000000e+00> : vector<8x256xf32>
    %168 = tpu.matmul %167, %2, %cst_83 {dimension_numbers = #tpu.dot_dimension_numbers<[1], [0], [0], [1], [0, 0, 1, 1], [], []>} : vector<8x4xbf16>, vector<4x256xbf16>, vector<8x256xf32> -> vector<8x256xf32>
    %c0_84 = arith.constant 0 : index
    %c0_85 = arith.constant 0 : index
    %169 = vector.load %arg7[%c0_84, %c0_85] : memref<8x1xf32, #tpu.memory_space<vmem>>, vector<8x1xf32>
    %170 = vector.broadcast %169 : vector<8x1xf32> to vector<8x256xf32>
    %171 = arith.addf %168, %170 : vector<8x256xf32>
    %172 = arith.addf %166, %171 : vector<8x256xf32>
    %c0_86 = arith.constant 0 : index
    %c0_87 = arith.constant 0 : index
    %c0_88 = arith.constant 0 : index
    %173 = vector.load %arg8[%c0_86, %c0_87, %c0_88] : memref<1x8x256xf32, #tpu.memory_space<vmem>>, vector<1x8x256xf32>
    %174 = vector.shape_cast %173 : vector<1x8x256xf32> to vector<8x256xf32>
    %175 = vector.shape_cast %172 : vector<8x256xf32> to vector<1x8x256xf32>
    tpu.vector_store %arg8[%c0_86, %c0_87, %c0_88], %175 {strides = array<i32>} : memref<1x8x256xf32, #tpu.memory_space<vmem>>, vector<1x8x256xf32>,
    return
  }
  func.func @transform_0(%arg0: i32) -> (i32, i32, i32) {
    %c0_i32 = arith.constant 0 : i32
    %c0_i32_0 = arith.constant 0 : i32
    %c0_i32_1 = arith.constant 0 : i32
    return %arg0, %c0_i32, %c0_i32_0 : i32, i32, i32
  }
  func.func @transform_1(%arg0: i32) -> (i32, i32, i32) {
    %c0_i32 = arith.constant 0 : i32
    %c0_i32_0 = arith.constant 0 : i32
    %c0_i32_1 = arith.constant 0 : i32
    %c0_i32_2 = arith.constant 0 : i32
    return %c0_i32, %c0_i32_0, %c0_i32_1 : i32, i32, i32
  }
  func.func @transform_2(%arg0: i32) -> (i32, i32) {
    %c0_i32 = arith.constant 0 : i32
    %c0_i32_0 = arith.constant 0 : i32
    %c0_i32_1 = arith.constant 0 : i32
    return %c0_i32, %c0_i32_0 : i32, i32
  }
  func.func @transform_3(%arg0: i32) -> (i32, i32, i32) {
    %c0_i32 = arith.constant 0 : i32
    %c0_i32_0 = arith.constant 0 : i32
    %c0_i32_1 = arith.constant 0 : i32
    %c0_i32_2 = arith.constant 0 : i32
    return %c0_i32, %c0_i32_0, %c0_i32_1 : i32, i32, i32
  }
  func.func @transform_4(%arg0: i32) -> (i32, i32) {
    %c0_i32 = arith.constant 0 : i32
    %c0_i32_0 = arith.constant 0 : i32
    %c0_i32_1 = arith.constant 0 : i32
    return %c0_i32, %c0_i32_0 : i32, i32
  }
  func.func @transform_5(%arg0: i32) -> (i32, i32) {
    %c0_i32 = arith.constant 0 : i32
    %c0_i32_0 = arith.constant 0 : i32
    %c0_i32_1 = arith.constant 0 : i32
    return %c0_i32, %c0_i32_0 : i32, i32
  }
  func.func @transform_6(%arg0: i32) -> (i32, i32) {
    %c0_i32 = arith.constant 0 : i32
    %c0_i32_0 = arith.constant 0 : i32
    %c0_i32_1 = arith.constant 0 : i32
    return %c0_i32, %c0_i32_0 : i32, i32
  }
  func.func @transform_7(%arg0: i32) -> (i32, i32, i32) {
    %c0_i32 = arith.constant 0 : i32
    %c0_i32_0 = arith.constant 0 : i32
    %c0_i32_1 = arith.constant 0 : i32
    return %arg0, %c0_i32, %c0_i32_0 : i32, i32, i32
  }
}

</mosaic_0001>

<bundles_post_ra>
// kernel: tpu_custom_call.1
= control target key start
LH: loop header
LB: loop body
LE: loop exit
PB: predicated region body
PF: predicated region fallthrough
CT: control target
= control target key end

     0   :  { %12 = vsyncpa [#allocation3], 0  ;;  %s2453_s0 = inlined_call_operand.vmem [shape: f32[2,4,256], index: 0, kind: input, shape index: {}]   ;;  %s2454_s1 = inlined_call_operand.vmem [shape: bf16[9,8,4], index: 1, kind: input, shape index: {}]   ;;  %s2455_s2 = inlined_call_operand.vmem [shape: f32[8,1], index: 2, kind: input, shape index: {}]   ;;  %s2456_s3 = inlined_call_operand.vmem [shape: bf16[9,8,8], index: 3, kind: input, shape index: {}]   ;;  %s2457_s4 = inlined_call_operand.vmem [shape: f32[8,1], index: 4, kind: input, shape index: {}]   ;;  %s2458_s5 = inlined_call_operand.vmem [shape: bf16[8,4], index: 5, kind: input, shape index: {}]   ;;  %s2459_s6 = inlined_call_operand.vmem [shape: f32[8,1], index: 6, kind: input, shape index: {}]   ;;  %s2460_s7 = inlined_call_operand.hbm [shape: f32[2,8,256], index: 7, kind: output, shape index: {}]  }
   0x1   :  { %14 = vsyncpa [#allocation3 + $0x1], 0  ;;  %s1993_s24 = smov 0   ;;  %s1995_s25 = smov 0  }
   0x2   :  { %s1997_s26 = smov 0   ;;  %s1999_s27 = smov 0  }
   0x3 LB: > { %s2014_s28 = sadd.s32 4294967295, %s1934_s27   ;;  %s1742_s29 = sadd.s32 4294967294, %s1934_s27   ;;  %s1934_s27 = sphi %s1999_s27, %s2466_s27   ;;  %s1930_s26 = sphi %s1997_s26, %s2465_s26   ;;  %s1926_s25 = sphi %s1995_s25, %s2464_s25   ;;  %s1922_s24 = sphi %s1993_s24, %s2463_s24  }
   0x4   : > { %s2018_s30 = sadd.s32 1, %s1934_s27   ;;  %s179_s8 = sadd.s32 1, %s1930_s26 }
   0x5   : > { %s176_s9 = ssub.s32 %s1934_s27, %s2018_s30  ;;  %p189_p0 = scmp.ne.s32.totalorder %s1930_s26, %s1926_s25 }
   0x6   : > { %p177_p1 = scmp.eq.s32.totalorder %s176_s9, 0  ;;  %p190_p2 = scmp.eq.s32.totalorder %s2014_s28, 1 }
   0x7   : > { %p195_p3 = scmp.ne.s32.totalorder %s1926_s25, %s1922_s24  ;;  %p196_p4 = scmp.eq.s32.totalorder %s1742_s29, 1 }
   0x8   : > { %s2029_s10 = scalar_select %p177_p1, %s1930_s26, %s179_s8  }
   0x9   : > { %p2031_p5 = por %p190_p2, %p189_p0  ;;  %p2035_p6 = por %p196_p4, %p195_p3 }
   0xa   : > { %p1745_p7 = scmp.ge.s32.totalorder %s1934_s27, 1  ;;  %p240_p8 = scmp.lt.s32.totalorder %s1934_s27, 3 }
   0xc   : > { %p241_p9 = pnand %p1745_p7, %p240_p8 }
   0xd   : > { %p272_p10 = scmp.lt.s32.totalorder (!%p241_p9), %s2014_s28, 1  ;;  %v284_v0 = vlaneseq (!%p241_p9)  ;;  %v1936_v8 = vmov (!%p241_p9), 0.0   ;;  %s1937_s18 = smov (!%p241_p9), 17   ;;  %vm333_vm4 = vcmask (!%p241_p9), 138240   ;;  %v1945_v21 = vmov (!%p241_p9), 0   ;;  %v982_v58 = vld [vmem:[%s2455_s2] sm:$0xff] (!%p241_p9) }
   0xe   : > { %244 = sbr.rel (%p241_p9) target bundleno = 1046 (0x416), region = 48  ;;  %s1938_s19 = smov (!%p241_p9), 2   ;;  %403 = vmatprep.mubr.bf16.mxu0 (!%p241_p9), %v1945_v21  ;;  %453 = vmatprep.mubr.bf16.mxu1 (!%p241_p9), %v1945_v21  ;;  %vm364_vm5 = vcmask (!%p241_p9), 1041408   ;;  %v346_v32 = vld [vmem:[%s2454_s1] sm:$0xf] (!%p241_p9)  ;;  %vm360_vm6 = vcmask (!%p241_p9), 31744  }
   0xf   : > { %v285_v1 = vand.u32 (!%p241_p9), 127, %v284_v0  ;;  %s1939_s20 = smov (!%p241_p9), 16   ;;  %s1940_s21 = smov (!%p241_p9), 18   ;;  %1869 = vset.pattern.permute.xlu0 (!%p241_p9), %v1945_v21  ;;  %1870 = vset.pattern.permute.xlu1 (!%p241_p9), %v1945_v21  ;;  %vm468_vm7 = vcmask (!%p241_p9), 15360   ;;  %vm548_vm8 = vcmask (!%p241_p9), 130048   ;;  %vm689_vm9 = vcmask (!%p241_p9), 146432  }
  0x10   : > { %s1941_s22 = smov (!%p241_p9), 32   ;;  %s1942_s23 = smov (!%p241_p9), 34   ;;  %vm767_vm10 = vcmask (!%p241_p9), 261120   ;;  %vm908_vm11 = vcmask (!%p241_p9), 277504   ;;  %vm357_vm12 = vcmask (!%p241_p9), 1039360   ;;  %vm487_vm13 = vcmask (!%p241_p9), 1031168  }
  0x11   : > { %v291_v2 = vand.u32 (!%p241_p9), 15, %v285_v1  ;;  %v286_v3 = vadd.s32 (!%p241_p9), 128, %v285_v1  ;;  %s1943_s29 = smov (!%p241_p9), 111   ;;  %s1944_s8 = smov (!%p241_p9), 127   ;;  %vm630_vm14 = vcmask (!%p241_p9), 908288   ;;  %vm567_vm15 = vcmask (!%p241_p9), 916480  }
  0x12   : > { %s1947_s15 = smov (!%p241_p9), 112   ;;  %s1948_s16 = smov (!%p241_p9), 96  }
  0x13   : > { %vm319_vm0 = vcmp.ne.s32.totalorder (!%p241_p9), %v291_v2, 15  ;;  %v298_v5 = vand.u32 (!%p241_p9), 15, %v286_v3  ;;  %vm311_vm1 = vcmp.ne.s32.totalorder (!%p241_p9), %v291_v2, 0  ;;  %v1753_v2 = vld [vmem:[%s2454_s1 + $0x4] sm:$0xf] (!%p241_p9) }
  0x14   : > { %v1751_v9 = vsel (!%p241_p9), %vm319_vm0, 1.0, %v1936_v8  ;;  %v1749_v14 = vsel (!%p241_p9), %vm311_vm1, 1.0, %v1936_v8  ;;  %vm708_vm0 = vcmask (!%p241_p9), 900096   ;;  %vm786_vm1 = vcmask (!%p241_p9), 785408  }
  0x15   : > { %s273_s13 = scalar_select %p272_p10, %s2014_s28, 1  ;;  %v325_v10 = vpack.c.bf16 %v1751_v9, %v1751_v9  ;;  %vm320_vm2 = vcmp.ne.s32.totalorder %v298_v5, 15  ;;  %vm312_vm3 = vcmp.ne.s32.totalorder %v298_v5, 0  ;;  %v2054_v16 = vpack.c.bf16 %v1749_v14, %v1749_v14 }
  0x16   : > { %v1752_v12 = vsel %vm320_vm2, 1.0, %v1936_v8  ;;  %v1750_v15 = vsel %vm312_vm3, 1.0, %v1936_v8  ;;  %vm849_vm2 = vcmask 777216   ;;  %vm927_vm3 = vcmask 769024  }
  0x17   : > { %s1812_s14 = sshll.u32 %s273_s13, 3  ;;  %464 = vrot.lane.b32.xlu1 %v325_v10, %s1938_s19  ;;  %v326_v13 = vpack.c.bf16 %v1752_v12, %v1752_v12  ;;  %v2056_v17 = vpack.c.bf16 %v1750_v15, %v1750_v15  ;;  %s269_s13 = sand.u32 1, %s1926_s25  }
  0x18   : > { %s276_s17 = scalar_lea.vmem %s2453_s0, %s1812_s14  ;;  %s1946_s14 = smov 126  }
  0x19   : > { %v278_v4 = vld [vmem:[%s276_s17] sm:$0xff]  ;;  %s1949_s17 = smov 110  }
  0x1a   : > { %v2046_v6 = vpack.c.bf16 %v278_v4, %v278_v4  ;;  %v280_v7 = vcombine.high %v278_v4, %v278_v4 }
  0x1b   : > { %466 = vrot.lane.b32.xlu1 %v326_v13, %s1938_s19  ;;  %s1950_s19 = smov 95  }
  0x1c   : > { %329 = vrot.lane.b32.xlu0 %v2046_v6, %s1937_s18  ;;  %v2050_v11 = vpack.c.bf16 %v280_v7, %v280_v7 }
  0x1f   : > { %546 = vrot.lane.b32.xlu1 %v2056_v17, %s1939_s20 }
  0x20   : > { %331 = vrot.lane.b32.xlu0 %v2050_v11, %s1937_s18 }
  0x23   : > { %687 = vrot.lane.b32.xlu1 %v326_v13, %s1940_s21 }
  0x24   : > { %544 = vrot.lane.b32.xlu0 %v2054_v16, %s1939_s20  ;;  %s1951_s20 = smov 94  }
  0x27   : > { %765 = vrot.lane.b32.xlu1 %v2056_v17, %s1941_s22 }
  0x28   : > { %685 = vrot.lane.b32.xlu0 %v325_v10, %s1940_s21  ;;  %s1746_s21 = sshll.u32 %s269_s13, 4 }
  0x2b   : > { %906 = vrot.lane.b32.xlu1 %v326_v13, %s1942_s23 }
  0x2c   : > { %763 = vrot.lane.b32.xlu0 %v2054_v16, %s1941_s22  ;;  %s1813_s22 = sshll.u32 %s2014_s28, 8  ;;  %s1669_s28 = scalar_lea.sflag [#allocation3], %s269_s13 }
  0x30   : > { %904 = vrot.lane.b32.xlu0 %v325_v10, %s1942_s23  ;;  %s271_s23 = scalar_lea.vmem [#allocation2], %s1746_s21 }
  0x89   : > { %v2065_v20 = vpop.permute.xlu1 %464 }
  0x8d   : > { %v2089_v27 = vpop.permute.xlu1 %466 }
  0x8e   : > { %v330_v18 = vpop.permute.xlu0 %329  ;;  %v2122_v38 = vsel %vm468_vm7, %v2065_v20, %v2089_v27 }
  0x8f   : > { %v2063_v19 = vsel %vm333_vm4, 0, %v330_v18 }
  0x90   : > { %624 = vrot.lane.b32.xlu1 %v2063_v19, %s1943_s29  ;;  %351 = vrot.lane.b32.xlu0 %v2063_v19, %s1944_s8  ;;  %v344_v23 = vmul.bf16 %v2063_v19, %v2054_v16  ;;  %v473_v28 = vmul.bf16 %v2065_v20, %v2063_v19 }
  0x91   : > { %v2107_v34 = vpop.permute.xlu1 %546 }
  0x92   : > { %v332_v22 = vpop.permute.xlu0 %331  ;;  %v416_v30 = vsel %vm364_vm5, %v344_v23, 0  ;;  %v1758_v23 = vld [vmem:[%s2454_s1 + $0x8] sm:$0xf] }
  0x93   : > { %v2078_v24 = vsel %vm333_vm4, %v330_v18, %v332_v22  ;;  %v2081_v25 = vsel %vm333_vm4, %v332_v22, 0 }
  0x94   : > { %355 = vrot.lane.b32.xlu0 %v2081_v25, %s1944_s8  ;;  %353 = vrot.lane.b32.xlu1 %v2078_v24, %s1944_s8  ;;  %v345_v26 = vmul.bf16 %v2078_v24, %v2056_v17  ;;  %v475_v35 = vmul.bf16 %v2089_v27, %v2081_v25  ;;  %v555_v36 = vmul.bf16 %v2107_v34, %v2081_v25 }
  0x95   : > { %v2125_v39 = vpop.permute.xlu1 %687  ;;  %v474_v42 = vmul.bf16 %v2122_v38, %v2078_v24 }
  0x96   : > { %1756 = vmatprep.subr.msk.bf16.mxu1 %vm364_vm5, %v345_v26  ;;  %v2094_v29 = vpop.permute.xlu0 %544  ;;  %v696_v48 = vmul.bf16 %v2125_v39, %v2081_v25 }
  0x97   : > { %v553_v31 = vmul.bf16 %v2094_v29, %v2063_v19  ;;  %422 = vmatpush1.bf16.msra.mxu1 %v416_v30  ;;  %v2132_v41 = vsel %vm548_vm8, %v2094_v29, %v2107_v34 }
  0x98   : > { %481 = vrot.lane.b32.xlu1 %v473_v28, %s1946_s14  ;;  %v554_v43 = vmul.bf16 %v2132_v41, %v2078_v24 }
  0x99   : > { %561 = vrot.lane.b32.xlu0 %v553_v31, %s1947_s15  ;;  %v2142_v45 = vpop.permute.xlu1 %765  ;;  %v1761_v31 = vld [vmem:[%s2454_s1 + $0xc] sm:$0xf] }
  0x9a   : > { %v2104_v33 = vpop.permute.xlu0 %685  ;;  %1757 = vmatmul.mubr.msk.bf16.vlgmr.msra.gmra.mrb[0].mxu1 %vm360_vm6, %v346_v32  ;;  %v774_v46 = vmul.bf16 %v2142_v45, %v2081_v25 }
  0x9b   : > { %611 = vmatprep.mubr.bf16.mxu1 %v1945_v21  ;;  %v694_v44 = vmul.bf16 %v2104_v33, %v2063_v19  ;;  %v2150_v47 = vsel %vm689_vm9, %v2104_v33, %v2125_v39  ;;  %vm1031_vm9 = vcmask 1043456  }
  0x9c   : > { %628 = vrot.lane.b32.xlu1 %v2081_v25, %s1943_s29  ;;  %v695_v49 = vmul.bf16 %v2150_v47, %v2078_v24 }
  0x9d   : > { %626 = vrot.lane.b32.xlu0 %v2078_v24, %s1943_s29  ;;  %v2171_v53 = vpop.permute.xlu1 %906 }
  0x9e   : > { %v2118_v37 = vpop.permute.xlu0 %763  ;;  %v915_v56 = vmul.bf16 %v2171_v53, %v2081_v25 }
  0x9f   : > { %v772_v40 = vmul.bf16 %v2118_v37, %v2063_v19  ;;  %v2160_v50 = vsel %vm767_vm10, %v2118_v37, %v2142_v45 }
  0xa0   : > { %485 = vrot.lane.b32.xlu1 %v475_v35, %s1946_s14  ;;  %v773_v52 = vmul.bf16 %v2160_v50, %v2078_v24 }
  0xa1   : > { %565 = vrot.lane.b32.xlu0 %v555_v36, %s1947_s15 }
  0xa2   : > { %v2165_v51 = vpop.permute.xlu0 %904 }
  0xa3   : > { %v913_v54 = vmul.bf16 %v2165_v51, %v2063_v19  ;;  %v2178_v55 = vsel %vm908_vm11, %v2165_v51, %v2171_v53 }
  0xa4   : > { %780 = vrot.lane.b32.xlu1 %v772_v40, %s1948_s16  ;;  %v914_v57 = vmul.bf16 %v2178_v55, %v2078_v24  ;;  %v1764_v40 = vld [vmem:[%s2454_s1 + $0x10] sm:$0xf] }
  0xa5   : > { %483 = vrot.lane.b32.xlu0 %v474_v42, %s1946_s14 }
  0xa8   : > { %563 = vrot.lane.b32.xlu1 %v554_v43, %s1947_s15 }
  0xa9   : > { %702 = vrot.lane.b32.xlu0 %v694_v44, %s1949_s17 }
  0xac   : > { %784 = vrot.lane.b32.xlu1 %v774_v46, %s1948_s16 }
  0xad   : > { %706 = vrot.lane.b32.xlu0 %v696_v48, %s1949_s17  ;;  %v1767_v48 = vld [vmem:[%s2454_s1 + $0x14] sm:$0xf] }
  0xb0   : > { %704 = vrot.lane.b32.xlu1 %v695_v49, %s1949_s17 }
  0xb1   : > { %843 = vrot.lane.b32.xlu0 %v2063_v19, %s1950_s19 }
  0xb4   : > { %845 = vrot.lane.b32.xlu1 %v2078_v24, %s1950_s19 }
  0xb5   : > { %782 = vrot.lane.b32.xlu0 %v773_v52, %s1948_s16 }
  0xb8   : > { %921 = vrot.lane.b32.xlu1 %v913_v54, %s1951_s20 }
  0xb9   : > { %847 = vrot.lane.b32.xlu0 %v2081_v25, %s1950_s19 }
  0xbc   : > { %925 = vrot.lane.b32.xlu1 %v915_v56, %s1951_s20 }
  0xbd   : > { %923 = vrot.lane.b32.xlu0 %v914_v57, %s1951_s20 }
  0xc1   : > { %985 = vperm.xlu0 %1869, %v982_v58  }
 0x102   : > { %v625_v59 = vpop.permute.xlu1 %624  ;;  %v352_v60 = vpop.permute.xlu0 %351 }
 0x106   : > { %v354_v61 = vpop.permute.xlu1 %353  ;;  %v356_v62 = vpop.permute.xlu0 %355 }
 0x107   : > { %v359_v63 = vsel %vm357_vm12, %v354_v61, %v356_v62  ;;  %v358_v0 = vsel %vm357_vm12, %v352_v60, %v354_v61  ;;  %v1770_v60 = vld [vmem:[%s2454_s1 + $0x18] sm:$0xf] }
 0x108   : > { %1754 = vmatprep.subr.msk.bf16.mxu0 %vm364_vm5, %v359_v63  ;;  %v366_v1 = vsel %vm364_vm5, %v358_v0, 0 }
 0x109   : > { %372 = vmatpush1.bf16.msra.mxu0 %v366_v1  ;;  %v1773_v1 = vld [vmem:[%s2454_s1 + $0x1c] sm:$0xf] }
 0x10a   : > { %v482_v3 = vpop.permute.xlu1 %481 }
 0x10b   : > { %v562_v4 = vpop.permute.xlu0 %561 }
 0x10c   : > { %1755 = vmatmul.mubr.msk.bf16.vlgmr.msra.gmra.mrb[0].mxu0 %vm360_vm6, %v1753_v2 }
 0x10d   : > { %531 = vmatprep.mubr.bf16.mxu0 %v1945_v21 }
 0x10e   : > { %v629_v5 = vpop.permute.xlu1 %628 }
 0x10f   : > { %v627_v7 = vpop.permute.xlu0 %626 }
 0x110   : > { %v631_v18 = vsel %vm630_vm14, %v625_v59, %v627_v7  ;;  %v632_v19 = vsel %vm630_vm14, %v627_v7, %v629_v5  ;;  %v1776_v7 = vld [vmem:[%s2454_s1 + $0x20] sm:$0xf] }
 0x111   : > { %v637_v30 = vsel %vm364_vm5, %v631_v18, 0 }
 0x112   : > { %v486_v8 = vpop.permute.xlu1 %485 }
 0x113   : > { %v566_v9 = vpop.permute.xlu0 %565 }
 0x116   : > { %v781_v10 = vpop.permute.xlu1 %780 }
 0x117   : > { %v484_v12 = vpop.permute.xlu0 %483 }
 0x118   : > { %v488_v13 = vsel %vm487_vm13, %v482_v3, %v484_v12  ;;  %v489_v14 = vsel %vm487_vm13, %v484_v12, %v486_v8 }
 0x119   : > { %v494_v15 = vsel %vm364_vm5, %v488_v13, 0  ;;  %1759 = vmatprep.subr.msk.bf16.mxu0 %vm364_vm5, %v489_v14 }
 0x11a   : > { %v564_v22 = vpop.permute.xlu1 %563  ;;  %500 = vmatpush1.bf16.msra.mxu0 %v494_v15 }
 0x11b   : > { %v568_v24 = vsel %vm567_vm15, %v562_v4, %v564_v22  ;;  %v569_v25 = vsel %vm567_vm15, %v564_v22, %v566_v9  ;;  %1765 = vmatprep.subr.msk.bf16.mxu0 %vm364_vm5, %v632_v19  ;;  %v703_v26 = vpop.permute.xlu0 %702 }
 0x11c   : > { %v574_v28 = vsel %vm364_vm5, %v568_v24, 0  ;;  %1762 = vmatprep.subr.msk.bf16.mxu1 %vm364_vm5, %v569_v25 }
 0x11d   : > { %1760 = vmatmul.mubr.msk.bf16.vlgmr.msra.gmra.mrb[4].mxu0 %vm360_vm6, %v1758_v23  ;;  %580 = vmatpush1.bf16.msra.mxu1 %v574_v28 }
 0x11e   : > { %v785_v32 = vpop.permute.xlu1 %784  ;;  %643 = vmatpush1.bf16.msra.mxu0 %v637_v30  ;;  %674 = vmatprep.mubr.bf16.mxu0 %v1945_v21 }
 0x11f   : > { %v707_v35 = vpop.permute.xlu0 %706 }
 0x120   : > { %1763 = vmatmul.mubr.msk.bf16.vlgmr.msra.gmra.mrb[4].mxu1 %vm360_vm6, %v1761_v31 }
 0x121   : > { %752 = vmatprep.mubr.bf16.mxu1 %v1945_v21 }
 0x122   : > { %v705_v36 = vpop.permute.xlu1 %704 }
 0x123   : > { %v709_v42 = vsel %vm708_vm0, %v703_v26, %v705_v36  ;;  %v710_v43 = vsel %vm708_vm0, %v705_v36, %v707_v35  ;;  %v844_v44 = vpop.permute.xlu0 %843 }
 0x124   : > { %v715_v46 = vsel %vm364_vm5, %v709_v42, 0  ;;  %1768 = vmatprep.subr.msk.bf16.mxu1 %vm364_vm5, %v710_v43 }
 0x125   : > { %1766 = vmatmul.mubr.msk.bf16.vlgmr.msra.gmra.mrb[8].mxu0 %vm360_vm6, %v1764_v40  ;;  %721 = vmatpush1.bf16.msra.mxu1 %v715_v46 }
 0x126   : > { %v846_v49 = vpop.permute.xlu1 %845  ;;  %830 = vmatprep.mubr.bf16.mxu0 %v1945_v21 }
 0x127   : > { %v783_v52 = vpop.permute.xlu0 %782  ;;  %v850_v58 = vsel %vm849_vm2, %v844_v44, %v846_v49 }
 0x128   : > { %v787_v54 = vsel %vm786_vm1, %v781_v10, %v783_v52  ;;  %v788_v56 = vsel %vm786_vm1, %v783_v52, %v785_v32  ;;  %1769 = vmatmul.mubr.msk.bf16.vlgmr.msra.gmra.mrb[8].mxu1 %vm360_vm6, %v1767_v48  ;;  %v856_v63 = vsel %vm364_vm5, %v850_v58, 0 }
 0x129   : > { %v793_v57 = vsel %vm364_vm5, %v787_v54, 0  ;;  %1771 = vmatprep.subr.msk.bf16.mxu0 %vm364_vm5, %v788_v56  ;;  %893 = vmatprep.mubr.bf16.mxu1 %v1945_v21 }
 0x12a   : > { %v922_v59 = vpop.permute.xlu1 %921  ;;  %799 = vmatpush1.bf16.msra.mxu0 %v793_v57 }
 0x12b   : > { %v848_v61 = vpop.permute.xlu0 %847 }
 0x12c   : > { %v851_v62 = vsel %vm849_vm2, %v846_v49, %v848_v61 }
 0x12d   : > { %1772 = vmatmul.mubr.msk.bf16.vlgmr.msra.gmra.mrb[12].mxu0 %vm360_vm6, %v1770_v60  ;;  %1774 = vmatprep.subr.msk.bf16.mxu1 %vm364_vm5, %v851_v62 }
 0x12e   : > { %v926_v0 = vpop.permute.xlu1 %925  ;;  %862 = vmatpush1.bf16.msra.mxu1 %v856_v63  ;;  %971 = vmatprep.mubr.bf16.mxu0 %v1945_v21 }
 0x12f   : > { %v924_v2 = vpop.permute.xlu0 %923 }
 0x130   : > { %v928_v3 = vsel %vm927_vm3, %v922_v59, %v924_v2  ;;  %v929_v4 = vsel %vm927_vm3, %v924_v2, %v926_v0 }
 0x131   : > { %v934_v5 = vsel %vm364_vm5, %v928_v3, 0  ;;  %1775 = vmatmul.mubr.msk.bf16.vlgmr.msra.gmra.mrb[12].mxu1 %vm360_vm6, %v1773_v1  ;;  %1777 = vmatprep.subr.msk.bf16.mxu0 %vm364_vm5, %v929_v4 }
 0x132   : > { %940 = vmatpush1.bf16.msra.mxu0 %v934_v5  ;;  %1070 = vmatprep.mubr.bf16.mxu1 %v1945_v21 }
 0x135   : > { %1778 = vmatmul.mubr.msk.bf16.vlgmr.msra.gmra.mrb[16].mxu0 %vm360_vm6, %v1776_v7 }
 0x136   : > { %1120 = vmatprep.mubr.bf16.mxu0 %v1945_v21 }
 0x16d   : > { %v455_v8 = vpop.f32.mrb[0].mxu1 }
 0x16e   : > { %v457_v9 = vpop.f32.mrb[1].mxu1 }
 0x16f   : > { %v459_v10 = vpop.f32.mrb[2].mxu1 }
 0x170   : > { %v460_v12 = vpop.f32.mrb[3].mxu1 }
 0x171   : > { %v986_v12 = vpop.permute.xlu0 %985 }
 0x1df   : > { %v405_v13 = vpop.f32.mrb[0].mxu0 }
 0x1e0   : > { %v407_v14 = vpop.f32.mrb[1].mxu0  ;;  %v456_v15 = vadd.f32 %v455_v8, %v405_v13 }
 0x1e1   : > { %v409_v18 = vpop.f32.mrb[2].mxu0  ;;  %v458_v19 = vadd.f32 %v457_v9, %v407_v14 }
 0x1e2   : > { %v410_v22 = vpop.f32.mrb[3].mxu0 }
 0x1f0   : > { %v533_v23 = vpop.f32.mrb[4].mxu0 }
 0x1f1   : > { %v540_v24 = vadd.f32 %v533_v23, %v456_v15  ;;  %v535_v25 = vpop.f32.mrb[5].mxu0 }
 0x1f2   : > { %v541_v26 = vadd.f32 %v535_v25, %v458_v19  ;;  %v537_v28 = vpop.f32.mrb[6].mxu0 }
 0x1f3   : > { %v538_v30 = vpop.f32.mrb[7].mxu0  ;;  %v613_v31 = vpop.f32.mrb[4].mxu1 }
 0x1f4   : > { %v620_v32 = vadd.f32 %v613_v31, %v540_v24  ;;  %v615_v35 = vpop.f32.mrb[5].mxu1 }
 0x1f5   : > { %v621_v36 = vadd.f32 %v615_v35, %v541_v26  ;;  %v617_v40 = vpop.f32.mrb[6].mxu1 }
 0x1f6   : > { %v618_v42 = vpop.f32.mrb[7].mxu1 }
 0x1f8   : > { %v676_v43 = vpop.f32.mrb[8].mxu0 }
 0x1f9   : > { %v683_v44 = vadd.f32 %v676_v43, %v620_v32  ;;  %v678_v46 = vpop.f32.mrb[9].mxu0 }
 0x1fa   : > { %v684_v48 = vadd.f32 %v678_v46, %v621_v36  ;;  %v680_v49 = vpop.f32.mrb[10].mxu0 }
 0x1fb   : > { %v681_v52 = vpop.f32.mrb[11].mxu0  ;;  %v754_v54 = vpop.f32.mrb[8].mxu1 }
 0x1fc   : > { %v761_v56 = vadd.f32 %v754_v54, %v683_v44  ;;  %v756_v57 = vpop.f32.mrb[9].mxu1 }
 0x1fd   : > { %v762_v58 = vadd.f32 %v756_v57, %v684_v48  ;;  %v758_v59 = vpop.f32.mrb[10].mxu1 }
 0x1fe   : > { %v759_v60 = vpop.f32.mrb[11].mxu1 }
 0x1ff   : > { %v1779_v60 = vld [vmem:[%s2456_s3 + $0x4] sm:$0xf] }
 0x200   : > { %v832_v61 = vpop.f32.mrb[12].mxu0 }
 0x201   : > { %v839_v62 = vadd.f32 %v832_v61, %v761_v56  ;;  %v834_v63 = vpop.f32.mrb[13].mxu0 }
 0x202   : > { %v840_v0 = vadd.f32 %v834_v63, %v762_v58  ;;  %v836_v1 = vpop.f32.mrb[14].mxu0 }
 0x203   : > { %v837_v2 = vpop.f32.mrb[15].mxu0 }
 0x204   : > { %v895_v3 = vpop.f32.mrb[12].mxu1 }
 0x205   : > { %v902_v4 = vadd.f32 %v895_v3, %v839_v62  ;;  %v897_v5 = vpop.f32.mrb[13].mxu1 }
 0x206   : > { %v903_v7 = vadd.f32 %v897_v5, %v840_v0  ;;  %v899_v8 = vpop.f32.mrb[14].mxu1 }
 0x207   : > { %v900_v9 = vpop.f32.mrb[15].mxu1 }
 0x208   : > { %v973_v10 = vpop.f32.mrb[16].mxu0 }
 0x209   : > { %v980_v13 = vadd.f32 %v973_v10, %v902_v4  ;;  %v975_v14 = vpop.f32.mrb[17].mxu0 }
 0x20a   : > { %v981_v15 = vadd.f32 %v975_v14, %v903_v7  ;;  %v977_v18 = vpop.f32.mrb[18].mxu0 }
 0x20b   : > { %v988_v19 = vadd.f32 %v986_v12, %v980_v13  ;;  %v978_v22 = vpop.f32.mrb[19].mxu0 }
 0x20c   : > { %v989_v23 = vadd.f32 %v986_v12, %v981_v15  ;;  %v1784_v12 = vld [vmem:[%s2456_s3 + $0x8] sm:$0xf] }
 0x20d   : > { %vm990_vm7 = vcmp.ge.f32.partialorder %v988_v19, 0.0  ;;  %v992_v24 = vmul.f32 0.01, %v988_v19 }
 0x20e   : > { %vm991_vm8 = vcmp.ge.f32.partialorder %v989_v23, 0.0  ;;  %v993_v25 = vmul.f32 0.01, %v989_v23 }
 0x20f   : > { %v994_v26 = vsel %vm990_vm7, %v988_v19, %v992_v24 }
 0x210   : > { %v996_v28 = vpack.c.bf16 %v994_v26, %v994_v26  ;;  %v995_v30 = vsel %vm991_vm8, %v989_v23, %v993_v25  ;;  %v1787_v23 = vld [vmem:[%s2456_s3 + $0xc] sm:$0xf]  ;;  %v1790_v26 = vld [vmem:[%s2456_s3 + $0x10] sm:$0xf] }
 0x211   : > { %v997_v31 = vpack.c.bf16 %v995_v30, %v995_v30 }
 0x212   : > { %1000 = vrot.lane.b32.xlu1 %v996_v28, %s1937_s18 }
 0x216   : > { %1002 = vrot.lane.b32.xlu1 %v997_v31, %s1937_s18  ;;  %s1683_s18 = sshll.u32 %s271_s23, 4  ;;  %s2411_s18 = int_to_ptr.vmem [resolvable:$true] %s1683_s18 }
 0x284   : > { %v1001_v32 = vpop.permute.xlu1 %1000 }
 0x285   : > { %v1007_v35 = vsel %vm333_vm4, 0, %v1001_v32 }
 0x286   : > { %1267 = vrot.lane.b32.xlu1 %v1007_v35, %s1943_s29  ;;  %1019 = vrot.lane.b32.xlu0 %v1007_v35, %s1944_s8  ;;  %v1012_v40 = vmul.bf16 %v1007_v35, %v2054_v16  ;;  %v1014_v16 = vld [vmem:[%s2456_s3] sm:$0xf]  ;;  %v1197_v48 = vmul.bf16 %v1007_v35, %v2094_v29  ;;  %v1129_v49 = vmul.bf16 %v1007_v35, %v2065_v20 }
 0x287   : > { %v1395_v52 = vmul.bf16 %v1007_v35, %v2118_v37 }
 0x288   : > { %v1003_v36 = vpop.permute.xlu1 %1002  ;;  %v1083_v46 = vsel %vm1031_vm9, %v1012_v40, 0 }
 0x289   : > { %v1004_v42 = vsel %vm333_vm4, %v1001_v32, %v1003_v36  ;;  %v1010_v43 = vsel %vm333_vm4, %v1003_v36, 0  ;;  %vm1027_vm4 = vcmask 64512   ;;  %v1793_v36 = vld [vmem:[%s2456_s3 + $0x14] sm:$0xf] }
 0x28a   : > { %1023 = vrot.lane.b32.xlu0 %v1010_v43, %s1944_s8  ;;  %1021 = vrot.lane.b32.xlu1 %v1004_v42, %s1944_s8  ;;  %v1013_v44 = vmul.bf16 %v1004_v42, %v2056_v17  ;;  %v1327_v17 = vmul.bf16 %v1007_v35, %v2104_v33  ;;  %v1131_v29 = vmul.bf16 %v1010_v43, %v2089_v27  ;;  %s2409_s8 = scalar_lea.hbm %s2460_s7, %s1813_s22 }
 0x28b   : > { %v1130_v20 = vmul.bf16 %v1004_v42, %v2122_v38  ;;  %v1198_v54 = vmul.bf16 %v1004_v42, %v2132_v41  ;;  %v1199_v56 = vmul.bf16 %v1010_v43, %v2107_v34  ;;  %v1328_v27 = vmul.bf16 %v1004_v42, %v2150_v47  ;;  %v1608_v47 = vld [vmem:[%s2459_s6] sm:$0xff] }
 0x28c   : > { %1782 = vmatprep.subr.msk.bf16.mxu0 %vm1031_vm9, %v1013_v44  ;;  %v1329_v33 = vmul.bf16 %v1010_v43, %v2125_v39  ;;  %v1397_v37 = vmul.bf16 %v1010_v43, %v2142_v45  ;;  %v1396_v34 = vmul.bf16 %v1004_v42, %v2160_v50  ;;  %v1525_v38 = vmul.bf16 %v1007_v35, %v2165_v51  ;;  %v1593_v45 = vld [vmem:[%s2457_s4] sm:$0xff] }
 0x28d   : > { %1089 = vmatpush1.bf16.msra.mxu0 %v1083_v46  ;;  %v1527_v39 = vmul.bf16 %v1010_v43, %v2171_v53  ;;  %v1526_v41 = vmul.bf16 %v1004_v42, %v2178_v55 }
 0x28e   : > { %1269 = vrot.lane.b32.xlu0 %v1004_v42, %s1943_s29  ;;  %1271 = vrot.lane.b32.xlu1 %v1010_v43, %s1943_s29 }
 0x290   : > { %1783 = vmatmul.mubr.msk.bf16.vlgmr.msra.gmra.mrb[20].mxu0 %vm1027_vm4, %v1014_v16 }
 0x291   : > { %1254 = vmatprep.mubr.bf16.mxu0 %v1945_v21 }
 0x292   : > { %1205 = vrot.lane.b32.xlu0 %v1197_v48, %s1947_s15  ;;  %1137 = vrot.lane.b32.xlu1 %v1129_v49, %s1946_s14  ;;  %v1796_v48 = vld [vmem:[%s2456_s3 + $0x18] sm:$0xf] }
 0x296   : > { %1335 = vrot.lane.b32.xlu0 %v1327_v17, %s1949_s17  ;;  %1403 = vrot.lane.b32.xlu1 %v1395_v52, %s1948_s16 }
 0x29a   : > { %1141 = vrot.lane.b32.xlu1 %v1131_v29, %s1946_s14  ;;  %1139 = vrot.lane.b32.xlu0 %v1130_v20, %s1946_s14  ;;  %v1799_v20 = vld [vmem:[%s2456_s3 + $0x1c] sm:$0xf]  ;;  %s1872_s14 = scalar_lea.vmem %s2411_s18, 256 }
 0x29b   : > { %p1873_p11 = scmp.ne.s32.totalorder %s2411_s18, %s1872_s14 }
 0x29d   : > { %p1874_p12 = pnand %p1873_p11, %p2031_p5 }
 0x29e   : > { %1207 = vrot.lane.b32.xlu1 %v1198_v54, %s1947_s15  ;;  %1209 = vrot.lane.b32.xlu0 %v1199_v56, %s1947_s15  ;;  %s1952_s15 = smov [#allocation2]  }
 0x29f   : > { %p1875_p13 = pneg %p1874_p12 }
 0x2a2   : > { %1467 = vrot.lane.b32.xlu1 %v1004_v42, %s1950_s19  ;;  %1465 = vrot.lane.b32.xlu0 %v1007_v35, %s1950_s19 }
 0x2a6   : > { %1337 = vrot.lane.b32.xlu1 %v1328_v27, %s1949_s17  ;;  %1339 = vrot.lane.b32.xlu0 %v1329_v33, %s1949_s17  ;;  %v1618_v27 = vsel %vm364_vm5, %v2046_v6, 0  ;;  %v1607_v6 = vld [vmem:[%s2458_s5] sm:$0xf] }
 0x2aa   : > { %1407 = vrot.lane.b32.xlu1 %v1397_v37, %s1948_s16  ;;  %1405 = vrot.lane.b32.xlu0 %v1396_v34, %s1948_s16  ;;  %s1876_s16 = sshll.u32 %s1952_s15, 4  ;;  %s1877_s16 = int_to_ptr.vmem [resolvable:$false] %s1876_s16 }
 0x2ab   : > { %s1878_s17 = scalar_lea.vmem %s1877_s16, 512  ;;  %p1879_p0 = scmp.lt.s32.totalorder %s2411_s18, %s1877_s16 }
 0x2ac   : > { %p1880_p1 = scmp.lt.s32.totalorder %s1878_s17, %s1872_s14 }
 0x2ae   : > { %1533 = vrot.lane.b32.xlu1 %v1525_v38, %s1951_s20  ;;  %1469 = vrot.lane.b32.xlu0 %v1010_v43, %s1950_s19  ;;  %v1802_v38 = vld [vmem:[%s2456_s3 + $0x20] sm:$0xf]  ;;  %p1881_p2 = por %p1880_p1, %p1879_p0 }
 0x2b0   : > { %p1882_p3 = pnand %p1881_p2, %p1875_p13 }
 0x2b2   : > { %1537 = vrot.lane.b32.xlu1 %v1527_v39, %s1951_s20  ;;  %1535 = vrot.lane.b32.xlu0 %v1526_v41, %s1951_s20 }
 0x2b6   : > { %1596 = vperm.xlu0 %1869, %v1593_v45   ;;  %1611 = vperm.xlu1 %1870, %v1608_v47  }
 0x2f8   : > { %v1020_v50 = vpop.permute.xlu0 %1019  ;;  %v1268_v51 = vpop.permute.xlu1 %1267 }
 0x2fc   : > { %v1024_v57 = vpop.permute.xlu0 %1023  ;;  %v1022_v53 = vpop.permute.xlu1 %1021 }
 0x2fd   : > { %v1025_v55 = vsel %vm357_vm12, %v1020_v50, %v1022_v53  ;;  %v1026_v58 = vsel %vm357_vm12, %v1022_v53, %v1024_v57 }
 0x2fe   : > { %v1033_v59 = vsel %vm1031_vm9, %v1025_v55, 0  ;;  %1780 = vmatprep.subr.msk.bf16.mxu1 %vm1031_vm9, %v1026_v58 }
 0x2ff   : > { %1039 = vmatpush1.bf16.msra.mxu1 %v1033_v59 }
 0x300   : > { %v1270_v61 = vpop.permute.xlu0 %1269  ;;  %v1272_v62 = vpop.permute.xlu1 %1271 }
 0x301   : > { %v1273_v9 = vsel %vm630_vm14, %v1268_v51, %v1270_v61  ;;  %v1274_v10 = vsel %vm630_vm14, %v1270_v61, %v1272_v62 }
 0x302   : > { %1781 = vmatmul.mubr.msk.bf16.vlgmr.msra.gmra.mrb[16].mxu1 %vm1027_vm4, %v1779_v60  ;;  %v1279_v19 = vsel %vm1031_vm9, %v1273_v9, 0 }
 0x303   : > { %1186 = vmatprep.mubr.bf16.mxu1 %v1945_v21 }
 0x304   : > { %v1206_v63 = vpop.permute.xlu0 %1205  ;;  %v1138_v0 = vpop.permute.xlu1 %1137 }
 0x308   : > { %v1336_v1 = vpop.permute.xlu0 %1335  ;;  %v1404_v2 = vpop.permute.xlu1 %1403 }
 0x30c   : > { %v1140_v3 = vpop.permute.xlu0 %1139  ;;  %v1142_v4 = vpop.permute.xlu1 %1141 }
 0x30d   : > { %v1143_v5 = vsel %vm487_vm13, %v1138_v0, %v1140_v3  ;;  %v1144_v7 = vsel %vm487_vm13, %v1140_v3, %v1142_v4 }
 0x30e   : > { %v1149_v8 = vsel %vm1031_vm9, %v1143_v5, 0  ;;  %1785 = vmatprep.subr.msk.bf16.mxu1 %vm1031_vm9, %v1144_v7 }
 0x30f   : > { %1155 = vmatpush1.bf16.msra.mxu1 %v1149_v8 }
 0x310   : > { %v1210_v13 = vpop.permute.xlu0 %1209  ;;  %1791 = vmatprep.subr.msk.bf16.mxu1 %vm1031_vm9, %v1274_v10  ;;  %v1208_v14 = vpop.permute.xlu1 %1207 }
 0x311   : > { %v1211_v15 = vsel %vm567_vm15, %v1206_v63, %v1208_v14  ;;  %v1212_v18 = vsel %vm567_vm15, %v1208_v14, %v1210_v13 }
 0x312   : > { %v1217_v22 = vsel %vm1031_vm9, %v1211_v15, 0  ;;  %1786 = vmatmul.mubr.msk.bf16.vlgmr.msra.gmra.mrb[20].mxu1 %vm1027_vm4, %v1784_v12  ;;  %1788 = vmatprep.subr.msk.bf16.mxu0 %vm1031_vm9, %v1212_v18 }
 0x313   : > { %1223 = vmatpush1.bf16.msra.mxu0 %v1217_v22  ;;  %1285 = vmatpush1.bf16.msra.mxu1 %v1279_v19 }
 0x314   : > { %v1466_v24 = vpop.permute.xlu0 %1465  ;;  %v1468_v25 = vpop.permute.xlu1 %1467  ;;  %1316 = vmatprep.mubr.bf16.mxu1 %v1945_v21 }
 0x315   : > { %v1471_v16 = vsel %vm849_vm2, %v1466_v24, %v1468_v25 }
 0x316   : > { %1789 = vmatmul.mubr.msk.bf16.vlgmr.msra.gmra.mrb[24].mxu0 %vm1027_vm4, %v1787_v23  ;;  %v1477_v29 = vsel %vm1031_vm9, %v1471_v16, 0 }
 0x317   : > { %1384 = vmatprep.mubr.bf16.mxu0 %v1945_v21 }
 0x318   : > { %v1340_v28 = vpop.permute.xlu0 %1339  ;;  %v1338_v30 = vpop.permute.xlu1 %1337 }
 0x319   : > { %v1341_v31 = vsel %vm708_vm0, %v1336_v1, %v1338_v30  ;;  %v1342_v32 = vsel %vm708_vm0, %v1338_v30, %v1340_v28 }
 0x31a   : > { %v1347_v35 = vsel %vm1031_vm9, %v1341_v31, 0  ;;  %1792 = vmatmul.mubr.msk.bf16.vlgmr.msra.gmra.mrb[24].mxu1 %vm1027_vm4, %v1790_v26  ;;  %1794 = vmatprep.subr.msk.bf16.mxu0 %vm1031_vm9, %v1342_v32 }
 0x31b   : > { %1353 = vmatpush1.bf16.msra.mxu0 %v1347_v35  ;;  %1452 = vmatprep.mubr.bf16.mxu1 %v1945_v21 }
 0x31c   : > { %v1406_v40 = vpop.permute.xlu0 %1405  ;;  %v1408_v42 = vpop.permute.xlu1 %1407 }
 0x31d   : > { %v1409_v43 = vsel %vm786_vm1, %v1404_v2, %v1406_v40  ;;  %v1410_v44 = vsel %vm786_vm1, %v1406_v40, %v1408_v42 }
 0x31e   : > { %v1415_v46 = vsel %vm1031_vm9, %v1409_v43, 0  ;;  %1795 = vmatmul.mubr.msk.bf16.vlgmr.msra.gmra.mrb[28].mxu0 %vm1027_vm4, %v1793_v36  ;;  %1797 = vmatprep.subr.msk.bf16.mxu1 %vm1031_vm9, %v1410_v44 }
 0x31f   : > { %1421 = vmatpush1.bf16.msra.mxu1 %v1415_v46  ;;  %1514 = vmatprep.mubr.bf16.mxu0 %v1945_v21 }
 0x320   : > { %v1470_v49 = vpop.permute.xlu0 %1469  ;;  %v1534_v17 = vpop.permute.xlu1 %1533 }
 0x321   : > { %v1472_v52 = vsel %vm849_vm2, %v1468_v25, %v1470_v49 }
 0x322   : > { %1798 = vmatmul.mubr.msk.bf16.vlgmr.msra.gmra.mrb[28].mxu1 %vm1027_vm4, %v1796_v48  ;;  %1800 = vmatprep.subr.msk.bf16.mxu0 %vm1031_vm9, %v1472_v52 }
 0x323   : > { %1483 = vmatpush1.bf16.msra.mxu0 %v1477_v29  ;;  %1582 = vmatprep.mubr.bf16.mxu1 %v1945_v21 }
 0x324   : > { %v1536_v54 = vpop.permute.xlu0 %1535  ;;  %v1538_v56 = vpop.permute.xlu1 %1537  ;;  %1805 = vmatprep.subr.msk.bf16.mxu0 %vm364_vm5, %v2050_v11 }
 0x325   : > { %v1539_v33 = vsel %vm927_vm3, %v1534_v17, %v1536_v54  ;;  %v1540_v37 = vsel %vm927_vm3, %v1536_v54, %v1538_v56 }
 0x326   : > { %v1545_v34 = vsel %vm1031_vm9, %v1539_v33, 0  ;;  %1801 = vmatmul.mubr.msk.bf16.vlgmr.msra.gmra.mrb[32].mxu0 %vm1027_vm4, %v1799_v20  ;;  %1803 = vmatprep.subr.msk.bf16.mxu1 %vm1031_vm9, %v1540_v37 }
 0x327   : > { %1551 = vmatpush1.bf16.msra.mxu1 %v1545_v34  ;;  %1624 = vmatpush1.bf16.msra.mxu0 %v1618_v27 }
 0x328   : > { %1655 = vmatprep.mubr.bf16.mxu0 %v1945_v21 }
 0x32a   : > { %1804 = vmatmul.mubr.msk.bf16.vlgmr.msra.gmra.mrb[32].mxu1 %vm1027_vm4, %v1802_v38 }
 0x32e   : > { %1806 = vmatmul.mubr.msk.bf16.vlgmr.msra.gmra.mrb[36].mxu0 %vm360_vm6, %v1607_v6 }
 0x335   : > { %v1597_v44 = vpop.permute.xlu0 %1596  ;;  %v1612_v17 = vpop.permute.xlu1 %1611 }
 0x363   : > { %v1122_v11 = vpop.f32.mrb[20].mxu0 }
 0x364   : > { %v1124_v39 = vpop.f32.mrb[21].mxu0 }
 0x365   : > { %v1126_v41 = vpop.f32.mrb[22].mxu0 }
 0x366   : > { %v1127_v45 = vpop.f32.mrb[23].mxu0 }
 0x3d5   : > { %v1072_v47 = vpop.f32.mrb[16].mxu1 }
 0x3d6   : > { %v1074_v50 = vpop.f32.mrb[17].mxu1  ;;  %v1123_v51 = vadd.f32 %v1122_v11, %v1072_v47 }
 0x3d7   : > { %v1076_v57 = vpop.f32.mrb[18].mxu1  ;;  %v1125_v53 = vadd.f32 %v1124_v39, %v1074_v50 }
 0x3d8   : > { %v1077_v55 = vpop.f32.mrb[19].mxu1 }
 0x3e5   : > { %v1188_v58 = vpop.f32.mrb[20].mxu1 }
 0x3e6   : > { %v1195_v21 = vadd.f32 %v1188_v58, %v1123_v51  ;;  %v1190_v59 = vpop.f32.mrb[21].mxu1 }
 0x3e7   : > { %v1196_v60 = vadd.f32 %v1190_v59, %v1125_v53  ;;  %v1192_v61 = vpop.f32.mrb[22].mxu1 }
 0x3e8   : > { %v1193_v62 = vpop.f32.mrb[23].mxu1 }
 0x3e9   : > { %v1256_v63 = vpop.f32.mrb[24].mxu0 }
 0x3ea   : > { %v1263_v0 = vadd.f32 %v1256_v63, %v1195_v21  ;;  %v1258_v1 = vpop.f32.mrb[25].mxu0 }
 0x3eb   : > { %v1264_v2 = vadd.f32 %v1258_v1, %v1196_v60  ;;  %v1260_v3 = vpop.f32.mrb[26].mxu0 }
 0x3ec   : > { %v1261_v4 = vpop.f32.mrb[27].mxu0 }
 0x3ed   : > { %v1318_v5 = vpop.f32.mrb[24].mxu1 }
 0x3ee   : > { %v1325_v7 = vadd.f32 %v1318_v5, %v1263_v0  ;;  %v1320_v8 = vpop.f32.mrb[25].mxu1 }
 0x3ef   : > { %v1326_v9 = vadd.f32 %v1320_v8, %v1264_v2  ;;  %v1322_v10 = vpop.f32.mrb[26].mxu1 }
 0x3f0   : > { %v1323_v12 = vpop.f32.mrb[27].mxu1 }
 0x3f1   : > { %v1386_v13 = vpop.f32.mrb[28].mxu0 }
 0x3f2   : > { %v1393_v14 = vadd.f32 %v1386_v13, %v1325_v7  ;;  %v1388_v15 = vpop.f32.mrb[29].mxu0 }
 0x3f3   : > { %v1394_v18 = vadd.f32 %v1388_v15, %v1326_v9  ;;  %v1390_v19 = vpop.f32.mrb[30].mxu0 }
 0x3f4   : > { %v1391_v22 = vpop.f32.mrb[31].mxu0 }
 0x3f5   : > { %v1454_v23 = vpop.f32.mrb[28].mxu1 }
 0x3f6   : > { %v1461_v24 = vadd.f32 %v1454_v23, %v1393_v14  ;;  %v1456_v25 = vpop.f32.mrb[29].mxu1 }
 0x3f7   : > { %v1462_v26 = vadd.f32 %v1456_v25, %v1394_v18  ;;  %v1458_v28 = vpop.f32.mrb[30].mxu1 }
 0x3f8   : > { %v1459_v30 = vpop.f32.mrb[31].mxu1 }
 0x3f9   : > { %v1516_v31 = vpop.f32.mrb[32].mxu0 }
 0x3fa   : > { %v1523_v32 = vadd.f32 %v1516_v31, %v1461_v24  ;;  %v1518_v35 = vpop.f32.mrb[33].mxu0 }
 0x3fb   : > { %v1524_v36 = vadd.f32 %v1518_v35, %v1462_v26  ;;  %v1520_v40 = vpop.f32.mrb[34].mxu0 }
 0x3fc   : > { %v1521_v42 = vpop.f32.mrb[35].mxu0 }
 0x3fd   : > { %v1584_v43 = vpop.f32.mrb[32].mxu1 }
 0x3fe   : > { %v1591_v46 = vadd.f32 %v1584_v43, %v1523_v32  ;;  %v1586_v16 = vpop.f32.mrb[33].mxu1 }
 0x3ff   : > { %v1592_v48 = vadd.f32 %v1586_v16, %v1524_v36  ;;  %v1588_v49 = vpop.f32.mrb[34].mxu1 }
 0x400   : > { %v1599_v52 = vadd.f32 %v1597_v44, %v1591_v46  ;;  %v1589_v29 = vpop.f32.mrb[35].mxu1 }
 0x401   : > { %v1600_v20 = vadd.f32 %v1597_v44, %v1592_v48  ;;  %v1657_v54 = vpop.f32.mrb[36].mxu0 }
 0x402   : > { %v1603_v56 = vmul.f32 0.01, %v1599_v52  ;;  %vm1601_vm5 = vcmp.ge.f32.partialorder %v1599_v52, 0.0  ;;  %v1658_v27 = vadd.f32 %v1657_v54, %v1612_v17  ;;  %v1659_v33 = vpop.f32.mrb[37].mxu0 }
 0x403   : > { %v1604_v37 = vmul.f32 0.01, %v1600_v20  ;;  %vm1602_vm6 = vcmp.ge.f32.partialorder %v1600_v20, 0.0  ;;  %v1660_v34 = vadd.f32 %v1659_v33, %v1612_v17  ;;  %v1661_v38 = vpop.f32.mrb[38].mxu0 }
 0x404   : > { %v1605_v6 = vsel %vm1601_vm5, %v1599_v52, %v1603_v56  ;;  %v1662_v11 = vpop.f32.mrb[39].mxu0 }
 0x405   : > { %v1664_v39 = vadd.f32 %v1658_v27, %v1605_v6  ;;  %v1606_v41 = vsel %vm1602_vm6, %v1600_v20, %v1604_v37 }
 0x406   : > { %v1665_v45 = vadd.f32 %v1660_v34, %v1606_v41 }
 0x407   : > { %1666 = vst [vmem:[%s271_s23] sm:$0xff] %v1664_v39 }
 0x408   : > { %1667 = vst [vmem:[%s271_s23 + $0x8] sm:$0xff] %v1665_v45 }
 0x409   : > { %1885 = shalt.err (!%p1882_p3)
}
 0x40a   : > { %s1886_s19 = scalar_lea.hbm %s2409_s8, 256  ;;  %s1890_s21 = scalar_lea.hbm %s2460_s7, 512 }
 0x40b   : > { %p1887_p4 = scmp.ne.s32.totalorder %s2409_s8, %s1886_s19  ;;  %p1891_p9 = scmp.lt.u32.totalorder %s2409_s8, %s2460_s7 }
 0x40c   : > { %p1892_p10 = scmp.lt.u32.totalorder %s1890_s21, %s1886_s19  ;;  %p1894_p12 = scmp.lt.u32.totalorder %s1886_s19, %s2409_s8 }
 0x40d   : > { %p1888_p7 = pnand %p1887_p4, %p2031_p5 }
 0x40e   : > { %p1893_p11 = por %p1892_p10, %p1891_p9 }
 0x40f   : > { %p1889_p8 = pneg %p1888_p7 }
 0x410   : > { %p1895_p13 = por %p1894_p12, %p1893_p11 }
 0x412   : > { %p1896_p0 = pnand %p1895_p13, %p1889_p8 }
 0x414   : > { %1899 = shalt.err (!%p1896_p0)
}
 0x415   : > { %1814 = dma.vmem_to_hbm [thread:$0]  (%p2031_p5), %s2411_s18, 256, %s2409_s8, %s1669_s28  }
 0x416 PF: > { %p1820_p1 = scmp.ge.s32.totalorder %s1934_s27, 2  ;;  %s1695_s9 = sand.u32 1, %s1922_s24  }
 0x417   : > { %s1696_s29 = scalar_lea.sflag [#allocation3], %s1695_s9 }
 0x418   : > { %p1817_p2 = pnand %p1820_p1, %p2035_p6 }
 0x41a   : > { %1917 = dma.done.wait (!%p1817_p2), %s1696_s29, 256  }
 0x41b   : > { %1919 = vsyncadd (!%p1817_p2), %s1696_s29, 4294967040  ;;  %p17_p3 = scmp.ge.s32.totalorder %s2018_s30, 4   ;;  %s2463_s24 = smov %s1926_s25 }
 0x41c   : > { %s2464_s25 = smov %s1930_s26  ;;  %s2465_s26 = smov %s2029_s10 }
 0x41d   : > { %s2466_s27 = smov %s2018_s30  ;;  %19 = sbr.rel (!%p17_p3) target bundleno = 3 (0x3), region = 99 }
 0x424   :  { %1701 = vsyncpa [#allocation3], 1 }
 0x425   :  { %1703 = vsyncpa [#allocation3 + $0x1], 1 }

</bundles_post_ra>
